<compile_context>
chip_gen: v7x
topology: tpu7x:2x2x1
jax: 0.10.0
libtpu: 0.0.40
codegen_flags: <defaults>
</compile_context>

<pallas_src>
import functools

import jax
import jax.numpy as jnp
from jax.experimental import pallas as pl
from jax.experimental.pallas import tpu as pltpu

LANE = 128            # vreg lane width
SUBLANE = 8           # f32 vreg sublane height (accumulator shape)
MAX_TILE_ROWS = 4096  # 4096 x 128 f32 = 2 MiB per input buffer


def _cdiv(a, b):
    return -(-a // b)


def _round_up(x, m):
    return _cdiv(x, m) * m


def _sublane_multiple(dtype):
    # Sub-32-bit dtypes pack along sublanes; keep row counts tile-aligned.
    return {4: 8, 2: 16, 1: 32}.get(jnp.dtype(dtype).itemsize, 8)


def _bpr_kernel(pos_ref, neg_ref, out_ref, acc_ref, *, gamma):
    i = pl.program_id(1)  # reduction step within this partial-sum group

    @pl.when(i == 0)
    def _init():
        acc_ref[...] = jnp.zeros_like(acc_ref)

    pos = pos_ref[...].astype(jnp.float32)
    neg = neg_ref[...].astype(jnp.float32)
    diff = pos - neg
    # Exact sigmoid (matches torch.sigmoid / jax.nn.sigmoid for the value
    # ranges of interest).  pl.reciprocal(1+exp(-diff), approx=True) would cut
    # one EUP+VPU refinement step but perturbs results by ~2^-12; keep exact
    # for parity with the PyTorch reference.
    sig = 1.0 / (1.0 + jnp.exp(-diff))
    val = -jnp.log(gamma + sig)

    # Fold sublane groups onto the (8, 128) accumulator: a short chain of plain
    # VPU vreg adds; no per-step full-tile read-modify-write of VMEM.
    tile_rows = val.shape[0]
    acc_ref[...] += jnp.sum(val.reshape(tile_rows // SUBLANE, SUBLANE, LANE), axis=0)

    # One-time cross-sublane reduce (XLU) in the epilogue; lane-dense store.
    @pl.when(i == pl.num_programs(1) - 1)
    def _finalize():
        out_ref[0] = jnp.sum(acc_ref[...], axis=0, keepdims=True)


def bpr_loss(pos_score, neg_score, gamma=1e-10, max_tile_rows=MAX_TILE_ROWS):
    """Pallas equivalent of BPRLoss.forward: -log(gamma + sigmoid(pos - neg)).mean()."""
    assert pos_score.shape == neg_score.shape
    assert pos_score.dtype == neg_score.dtype
    n = int(pos_score.size)

    pos = jnp.ravel(pos_score)
    neg = jnp.ravel(neg_score)

    sub_mult = _sublane_multiple(pos.dtype)
    rows_min = _round_up(_cdiv(n, LANE), sub_mult)
    tile_rows = min(_round_up(max_tile_rows, sub_mult), rows_min)
    n_blocks = _cdiv(rows_min, tile_rows)
    # Always split the stream into 2 partial-sum groups when there are >= 2
    # blocks so both v7x TensorCores participate; pad the block count to even.
    num_groups = 2 if n_blocks >= 2 else 1
    n_blocks = _round_up(n_blocks, num_groups)
    inner = n_blocks // num_groups
    padded_rows = n_blocks * tile_rows
    padded_n = padded_rows * LANE

    # Neutral padding (pos - neg = +30 -> sigmoid ~= 1 -> loss ~= -log(1+gamma)
    # ~= -1e-10 per padded element) removes the need for any in-kernel mask.
    if padded_n != n:
        pos = jnp.pad(pos, (0, padded_n - n), constant_values=30.0)
        neg = jnp.pad(neg, (0, padded_n - n), constant_values=0.0)
    pos2d = pos.reshape(padded_rows, LANE)
    neg2d = neg.reshape(padded_rows, LANE)

    kernel = functools.partial(_bpr_kernel, gamma=float(gamma))

    def in_map(grp, blk):
        return (grp * inner + blk, 0)

    itemsize = jnp.dtype(pos2d.dtype).itemsize
    cost = pl.CostEstimate(
        flops=6 * padded_n,
        transcendentals=2 * padded_n,
        bytes_accessed=2 * padded_n * itemsize + num_groups * LANE * 4,
    )

    partials = pl.pallas_call(
        kernel,
        out_shape=jax.ShapeDtypeStruct((num_groups, 1, LANE), jnp.float32),
        grid_spec=pltpu.PrefetchScalarGridSpec(
            num_scalar_prefetch=0,
            grid=(num_groups, inner),
            in_specs=[
                pl.BlockSpec((tile_rows, LANE), in_map),
                pl.BlockSpec((tile_rows, LANE), in_map),
            ],
            out_specs=pl.BlockSpec((1, 1, LANE), lambda grp, blk: (grp, 0, 0)),
            scratch_shapes=[pltpu.VMEM((SUBLANE, LANE), jnp.float32)],
        ),
        compiler_params=pltpu.CompilerParams(
            dimension_semantics=("parallel", "arbitrary"),
        ),
        cost_estimate=cost,
    )(pos2d, neg2d)
    # TODO(synk): if an xprof trace ever shows exposed DMA at step boundaries
    # (very few, very large steps), add pipeline_mode=pl.Buffered(3) to in_specs.

    return jnp.sum(partials) / n


if __name__ == "__main__":
    key = jax.random.PRNGKey(0)
    k1, k2, k3, k4, k5, k6 = jax.random.split(key, 6)

    def reference(p, q, gamma=1e-10):
        p32 = p.astype(jnp.float32)
        q32 = q.astype(jnp.float32)
        return -jnp.log(gamma + jax.nn.sigmoid(p32 - q32)).mean()

    # 1) Small ragged case: single block, neutral-padded tail.
    n1 = 1000
    p1 = jax.random.normal(k1, (n1,), dtype=jnp.float32)
    q1 = jax.random.normal(k2, (n1,), dtype=jnp.float32)
    o1 = jax.block_until_ready(bpr_loss(p1, q1))
    r1 = reference(p1, q1)
    assert jnp.allclose(o1, r1, rtol=1e-4, atol=1e-5), (o1, r1)

    # 2) Multi-block grid with 2 partial-sum groups (small tile to force it).
    n2 = 40_000
    p2 = jax.random.normal(k3, (n2,), dtype=jnp.float32)
    q2 = jax.random.normal(k4, (n2,), dtype=jnp.float32)
    o2 = jax.block_until_ready(bpr_loss(p2, q2, max_tile_rows=32))
    r2 = reference(p2, q2)
    assert jnp.allclose(o2, r2, rtol=1e-4, atol=1e-5), (o2, r2)

    # 3) bf16 inputs: exercises 16-row sublane padding + in-kernel f32 upcast.
    n3 = 5000
    p3 = jax.random.normal(k5, (n3,), dtype=jnp.bfloat16)
    q3 = jax.random.normal(k6, (n3,), dtype=jnp.bfloat16)
    o3 = jax.block_until_ready(bpr_loss(p3, q3))
    r3 = reference(p3, q3)
    assert jnp.allclose(o3, r3, rtol=1e-3, atol=1e-4), (o3, r3)

    print("KERNEL_OK")
</pallas_src>

<mosaic_0001>
module attributes {stable_mosaic.version = 11 : i64} {
  func.func @_bpr_kernel(%arg0: i32, %arg1: i32, %arg2: memref<8x128xf32, #tpu.memory_space<vmem>>, %arg3: memref<8x128xf32, #tpu.memory_space<vmem>>, %arg4: memref<1x1x128xf32, #tpu.memory_space<vmem>>, %arg5: memref<8x128xf32, #tpu.memory_space<vmem>>) attributes {dimension_semantics = [#tpu.dimension_semantics<parallel>, #tpu.dimension_semantics<arbitrary>], iteration_bounds = array<i64: 1, 1>, scalar_prefetch = 0 : i64, scratch_operands = 1 : i64, tpu.core_type = #tpu.core_type<tc>, window_params = [{transform_indices = @transform_0, window_bounds = array<i64: 8, 128>}, {transform_indices = @transform_1, window_bounds = array<i64: 8, 128>}, {transform_indices = @transform_2, window_bounds = array<i64: 1, 1, 128>}]} {
    %c0_i32 = arith.constant 0 : i32
    %0 = arith.cmpi eq, %arg1, %c0_i32 : i32
    %1 = arith.extui %0 : i1 to i32
    %c0_i32_0 = arith.constant 0 : i32
    %2 = arith.cmpi ne, %1, %c0_i32_0 : i32
    scf.if %2 {
      %cst_15 = arith.constant 0.000000e+00 : f32
      %26 = vector.broadcast %cst_15 : f32 to vector<8x128xf32>
      %c0_16 = arith.constant 0 : index
      %c0_17 = arith.constant 0 : index
      %27 = vector.load %arg5[%c0_16, %c0_17] : memref<8x128xf32, #tpu.memory_space<vmem>>, vector<8x128xf32>
      tpu.vector_store %arg5[%c0_16, %c0_17], %26 {strides = array<i32>} : memref<8x128xf32, #tpu.memory_space<vmem>>, vector<8x128xf32>,
    } else {
    }
    %c0 = arith.constant 0 : index
    %c0_1 = arith.constant 0 : index
    %3 = vector.load %arg2[%c0, %c0_1] : memref<8x128xf32, #tpu.memory_space<vmem>>, vector<8x128xf32>
    %c0_2 = arith.constant 0 : index
    %c0_3 = arith.constant 0 : index
    %4 = vector.load %arg3[%c0_2, %c0_3] : memref<8x128xf32, #tpu.memory_space<vmem>>, vector<8x128xf32>
    %5 = arith.subf %3, %4 : vector<8x128xf32>
    %cst = arith.constant 0.000000e+00 : f32
    %6 = vector.broadcast %cst : f32 to vector<8x128xf32>
    %7 = arith.subf %6, %5 : vector<8x128xf32>
    %8 = math.exp %7 : vector<8x128xf32>
    %cst_4 = arith.constant 1.000000e+00 : f32
    %9 = vector.broadcast %cst_4 : f32 to vector<8x128xf32>
    %10 = arith.addf %9, %8 : vector<8x128xf32>
    %cst_5 = arith.constant 1.000000e+00 : f32
    %11 = vector.broadcast %cst_5 : f32 to vector<8x128xf32>
    %12 = arith.divf %11, %10 : vector<8x128xf32>
    %cst_6 = arith.constant 1.000000e-10 : f32
    %13 = vector.broadcast %cst_6 : f32 to vector<8x128xf32>
    %14 = arith.addf %13, %12 : vector<8x128xf32>
    %15 = math.log %14 : vector<8x128xf32>
    %cst_7 = arith.constant 0.000000e+00 : f32
    %16 = vector.broadcast %cst_7 : f32 to vector<8x128xf32>
    %17 = arith.subf %16, %15 : vector<8x128xf32>
    %c0_8 = arith.constant 0 : index
    %c0_9 = arith.constant 0 : index
    %18 = vector.load %arg5[%c0_8, %c0_9] : memref<8x128xf32, #tpu.memory_space<vmem>>, vector<8x128xf32>
    %19 = vector.shape_cast %17 : vector<8x128xf32> to vector<1x8x128xf32>
    %cst_10 = arith.constant dense<0.000000e+00> : vector<8x128xf32>
    %20 = vector.multi_reduction <add>, %19, %cst_10 [0] : vector<1x8x128xf32> to vector<8x128xf32>
    %21 = arith.addf %18, %20 : vector<8x128xf32>
    %c0_11 = arith.constant 0 : index
    %c0_12 = arith.constant 0 : index
    %22 = vector.load %arg5[%c0_11, %c0_12] : memref<8x128xf32, #tpu.memory_space<vmem>>, vector<8x128xf32>
    tpu.vector_store %arg5[%c0_11, %c0_12], %21 {strides = array<i32>} : memref<8x128xf32, #tpu.memory_space<vmem>>, vector<8x128xf32>,
    %c0_i32_13 = arith.constant 0 : i32
    %23 = arith.cmpi eq, %arg1, %c0_i32_13 : i32
    %24 = arith.extui %23 : i1 to i32
    %c0_i32_14 = arith.constant 0 : i32
    %25 = arith.cmpi ne, %24, %c0_i32_14 : i32
    scf.if %25 {
      %c0_15 = arith.constant 0 : index
      %c0_16 = arith.constant 0 : index
      %26 = vector.load %arg5[%c0_15, %c0_16] : memref<8x128xf32, #tpu.memory_space<vmem>>, vector<8x128xf32>
      %cst_17 = arith.constant dense<0.000000e+00> : vector<128xf32>
      %27 = vector.multi_reduction <add>, %26, %cst_17 [0] : vector<8x128xf32> to vector<128xf32>
      %28 = vector.shape_cast %27 : vector<128xf32> to vector<1x128xf32>
      %c0_18 = arith.constant 0 : index
      %c0_19 = arith.constant 0 : index
      %c0_20 = arith.constant 0 : index
      %29 = vector.load %arg4[%c0_18, %c0_19, %c0_20] : memref<1x1x128xf32, #tpu.memory_space<vmem>>, vector<1x1x128xf32>
      %30 = vector.shape_cast %29 : vector<1x1x128xf32> to vector<1x128xf32>
      %31 = vector.shape_cast %28 : vector<1x128xf32> to vector<1x1x128xf32>
      tpu.vector_store %arg4[%c0_18, %c0_19, %c0_20], %31 {strides = array<i32>} : memref<1x1x128xf32, #tpu.memory_space<vmem>>, vector<1x1x128xf32>,
    } else {
    }
    return
  }
  func.func @transform_0(%arg0: i32, %arg1: i32) -> (i32, i32) {
    %c1_i32 = arith.constant 1 : i32
    %0 = arith.muli %arg0, %c1_i32 : i32
    %1 = arith.addi %0, %arg1 : i32
    %c0_i32 = arith.constant 0 : i32
    %c0_i32_0 = arith.constant 0 : i32
    return %1, %c0_i32 : i32, i32
  }
  func.func @transform_1(%arg0: i32, %arg1: i32) -> (i32, i32) {
    %c1_i32 = arith.constant 1 : i32
    %0 = arith.muli %arg0, %c1_i32 : i32
    %1 = arith.addi %0, %arg1 : i32
    %c0_i32 = arith.constant 0 : i32
    %c0_i32_0 = arith.constant 0 : i32
    return %1, %c0_i32 : i32, i32
  }
  func.func @transform_2(%arg0: i32, %arg1: i32) -> (i32, i32, i32) {
    %c0_i32 = arith.constant 0 : i32
    %c0_i32_0 = arith.constant 0 : i32
    %c0_i32_1 = arith.constant 0 : i32
    return %arg0, %c0_i32, %c0_i32_0 : i32, i32, i32
  }
}

</mosaic_0001>

<bundles_post_ra>
// kernel: tpu_custom_call.1
= control target key start
LH: loop header
LB: loop body
LE: loop exit
PB: predicated region body
PF: predicated region fallthrough
CT: control target
= control target key end

     0   :  { %7 = vsyncpa [#allocation4], 0  ;;  %s228_s0 = inlined_call_operand.hbm [shape: f32[8,128], index: 0, kind: input, shape index: {}]   ;;  %s229_s1 = inlined_call_operand.hbm [shape: f32[8,128], index: 1, kind: input, shape index: {}]   ;;  %s230_s2 = inlined_call_operand.hbm [shape: f32[1,1,128], index: 2, kind: output, shape index: {}]  }
   0x1   :  { %8 = vsyncpa [#allocation7], 0 }
   0x2   :  { %9 = vsyncpa [#allocation5], 0  ;;  %s174_s9 = smov [#allocation3]   ;;  %s175_s11 = smov [#allocation6]  }
   0x3   :  { %s19_s10 = sshll.u32 %s174_s9, 4  ;;  %s32_s12 = sshll.u32 %s175_s11, 4  ;;  %s20_s10 = int_to_ptr.vmem [resolvable:$true] %s19_s10  ;;  %s33_s12 = int_to_ptr.vmem [resolvable:$true] %s32_s12 }
   0x4   :  { %s102_s15 = scalar_lea.hbm %s228_s0, 128 }
   0x5   :  { %p103_p0 = scmp.ne.s32.totalorder %s228_s0, %s102_s15  ;;  %p106_p1 = scmp.lt.u32.totalorder %s102_s15, %s228_s0 }
   0x7   :  { %p108_p2 = pnand %p106_p1, %p103_p0 }
   0x9   :  { %111 = shalt.err (!%p108_p2)
}
   0xa   :  { %s112_s20 = scalar_lea.vmem %s20_s10, 128  ;;  %p117_p4 = scmp.lt.s32.totalorder %s20_s10, %s20_s10 }
   0xb   :  { %p113_p3 = scmp.ne.s32.totalorder %s20_s10, %s112_s20  ;;  %p118_p5 = scmp.lt.s32.totalorder %s112_s20, %s112_s20 }
   0xd   :  { %p119_p6 = por %p118_p5, %p117_p4 }
   0xf   :  { %p120_p7 = pnand %p119_p6, %p113_p3 }
  0x11   :  { %123 = shalt.err (!%p120_p7)
}
  0x12   :  { %22 = dma.hbm_to_vmem [thread:$0]  %s228_s0, 128, %s20_s10, [#allocation4]  }
  0x13   :  { %s124_s25 = scalar_lea.hbm %s229_s1, 128 }
  0x14   :  { %p125_p8 = scmp.ne.s32.totalorder %s229_s1, %s124_s25  ;;  %p128_p9 = scmp.lt.u32.totalorder %s124_s25, %s229_s1 }
  0x16   :  { %p130_p10 = pnand %p128_p9, %p125_p8 }
  0x18   :  { %133 = shalt.err (!%p130_p10)
}
  0x19   :  { %s134_s30 = scalar_lea.vmem %s33_s12, 128  ;;  %p139_p12 = scmp.lt.s32.totalorder %s33_s12, %s33_s12 }
  0x1a   :  { %p135_p11 = scmp.ne.s32.totalorder %s33_s12, %s134_s30  ;;  %p140_p13 = scmp.lt.s32.totalorder %s134_s30, %s134_s30 }
  0x1c   :  { %p141_p0 = por %p140_p13, %p139_p12 }
  0x1e   :  { %p142_p1 = pnand %p141_p0, %p135_p11 }
  0x20   :  { %145 = shalt.err (!%p142_p1)
}
  0x21   :  { %35 = dma.hbm_to_vmem [thread:$0]  %s229_s1, 128, %s33_s12, [#allocation7]  }
  0x22   :  { %168 = dma.done.wait [#allocation4], 128  }
  0x23   :  { %169 = vsyncadd [#allocation4], 4294967168 }
  0x24   :  { %170 = dma.done.wait [#allocation7], 128  }
  0x25   :  { %171 = vsyncadd [#allocation7], 4294967168  ;;  %v49_v0 = vld [vmem:[#allocation3] sm:$0xff]  ;;  %v50_v1 = vld [vmem:[#allocation6] sm:$0xff]  ;;  %s176_s1 = smov [#allocation8]  }
  0x26   :  { %v51_v2 = vsub.f32 %v49_v0, %v50_v1  ;;  %s83_s4 = sshll.u32 %s176_s1, 4  ;;  %s84_s4 = int_to_ptr.vmem [resolvable:$true] %s83_s4 }
  0x27   :  { %s146_s5 = scalar_lea.vmem %s84_s4, 16  ;;  %s150_s6 = scalar_lea.vmem %s84_s4, 32 }
  0x28   :  { %v52_v3 = vsub.f32 0.0, %v51_v2  ;;  %p147_p2 = scmp.ne.s32.totalorder %s84_s4, %s146_s5  ;;  %p151_p3 = scmp.lt.s32.totalorder %s84_s4, %s84_s4 }
  0x29   :  { %p152_p4 = scmp.lt.s32.totalorder %s150_s6, %s146_s5 }
  0x2a   :  { %v53_v4 = vmul.f32 1.442695, %v52_v3 }
  0x2b   :  { %p153_p5 = por %p152_p4, %p151_p3 }
  0x2c   :  { %96 = vpow2.f32 %v53_v4 }
  0x2d   :  { %p154_p6 = pnand %p153_p5, %p147_p2 }
  0x36   :  { %v97_v5 = vpop.eup %96 }
  0x37   :  { %v55_v6 = vadd.f32 1.0, %v97_v5 }
  0x39   :  { %98 = vrcp.f32 %v55_v6 }
  0x43   :  { %v99_v7 = vpop.eup %98 }
  0x44   :  { %v58_v8 = vadd.f32 1e-10, %v99_v7 }
  0x46   :  { %100 = vlog2.f32 %v58_v8 }
  0x50   :  { %v101_v9 = vpop.eup %100 }
  0x51   :  { %v60_v10 = vmul.f32 0.6931472, %v101_v9 }
  0x53   :  { %v61_v11 = vsub.f32 0.0, %v60_v10 }
  0x55   :  { %v70_v12 = vrot.slane %v61_v11, 4 }
  0x57   :  { %v71_v13 = vadd.f32 %v70_v12, %v61_v11 }
  0x59   :  { %v72_v14 = vrot.slane %v71_v13, 2 }
  0x5b   :  { %v73_v15 = vadd.f32 %v72_v14, %v71_v13 }
  0x5d   :  { %v74_v16 = vrot.slane %v73_v15, 1 }
  0x5f   :  { %v75_v17 = vadd.f32 %v74_v16, %v73_v15 }
  0x61   :  { %76 = vst [vmem:[#allocation8] sm:$0x1] %v75_v17 }
  0x62   :  { %157 = shalt.err (!%p154_p6)
}
  0x63   :  { %s158_s9 = scalar_lea.hbm %s230_s2, 16 }
  0x64   :  { %p159_p7 = scmp.ne.s32.totalorder %s230_s2, %s158_s9  ;;  %p162_p8 = scmp.lt.u32.totalorder %s158_s9, %s230_s2 }
  0x66   :  { %p164_p9 = pnand %p162_p8, %p159_p7 }
  0x68   :  { %167 = shalt.err (!%p164_p9)
}
  0x69   :  { %86 = dma.vmem_to_hbm [thread:$0]  %s84_s4, 16, %s230_s2, [#allocation5]  }
  0x6a   :  { %172 = dma.done.wait [#allocation5], 16  }
  0x6b   :  { %173 = vsyncadd [#allocation5], 4294967280 }
  0x6c   :  { %90 = vsyncpa [#allocation4], 1 }
  0x6d   :  { %91 = vsyncpa [#allocation7], 1 }
  0x6e   :  { %92 = vsyncpa [#allocation5], 1 }

</bundles_post_ra>
